<compile_context>
chip_gen: v7x
topology: tpu7x:2x2x1
jax: 0.10.0
libtpu: 0.0.40
codegen_flags: <defaults>
</compile_context>

<pallas_src>
from math import floor

import jax
import jax.numpy as jnp
from jax.experimental import pallas as pl
from jax.experimental.pallas import tpu as pltpu

_BN_EPS = 1e-5
_VMEM_LIMIT = 32 * 1024 * 1024  # stays within scoped VMEM on v5e/v6e/v7x


def _pick_l_tile(length):
    # Largest lane-dense tile that divides L (satisfies the (8,128) constraint);
    # fall back to the full length (block == full array dim is always allowed).
    for t in (512, 256, 128):
        if length % t == 0:
            return t
    return length


def _stats_kernel(x_ref, sum_ref, sq_ref):
    # x_ref: (N, Cin, TL).  Accumulate per-channel sum / sum-of-squares across
    # the L-tile grid axis (output blocks are resident accumulators).
    @pl.when(pl.program_id(0) == 0)
    def _init():
        sum_ref[...] = jnp.zeros_like(sum_ref)
        sq_ref[...] = jnp.zeros_like(sq_ref)

    x = x_ref[...].astype(jnp.float32)
    sum_ref[...] += jnp.sum(x, axis=(0, 2), keepdims=True)
    sq_ref[...] += jnp.sum(x * x, axis=(0, 2), keepdims=True)


def _bn_relu_conv_kernel(x_ref, scale_ref, shift_ref, w_ref, o_ref):
    # x_ref: (Cin, TL)   scale/shift: (Cin, 1)   w_ref: (Cout, Cin)
    # o_ref: (Cout, TL)  -- lane-dense, offset-0 store.
    x = x_ref[...].astype(jnp.float32)
    # BN folded into a per-channel affine, then ReLU.
    y = jnp.maximum(x * scale_ref[...] + shift_ref[...], 0.0)
    # 1x1 Conv1d == one (Cout, Cin) @ (Cin, TL) matmul on the MXU.
    out = jnp.dot(w_ref[...], y, preferred_element_type=jnp.float32)
    o_ref[...] = out.astype(o_ref.dtype)


def dense_block_hidden_basic(x, gamma, beta, conv_weight, kernel_size):
    """x: (N, Cin, L). conv_weight: (Cout, Cin, 1). Returns (N, Cout, L + 2*pad)."""
    n, cin, length = x.shape
    cout = conv_weight.shape[0]
    pad = int(floor((kernel_size - 1) / 2))
    tl = _pick_l_tile(length)
    n_l_tiles = length // tl

    # ---- pass 1: per-channel batch statistics (training-mode BN) -----------
    x_sum, x_sq = pl.pallas_call(
        _stats_kernel,
        out_shape=(
            jax.ShapeDtypeStruct((1, cin, 1), jnp.float32),
            jax.ShapeDtypeStruct((1, cin, 1), jnp.float32),
        ),
        grid=(n_l_tiles,),
        in_specs=[pl.BlockSpec((n, cin, tl), lambda l: (0, 0, l))],
        out_specs=(
            pl.BlockSpec((1, cin, 1), lambda l: (0, 0, 0)),
            pl.BlockSpec((1, cin, 1), lambda l: (0, 0, 0)),
        ),
        compiler_params=pltpu.CompilerParams(
            dimension_semantics=("arbitrary",),
            vmem_limit_bytes=_VMEM_LIMIT,
        ),
    )(x)

    # Fold BN into a per-channel affine (tiny O(Cin) math outside the kernel):
    # scale = gamma * rsqrt(var + eps), shift = beta - mean * scale.
    count = jnp.float32(n * length)
    mean = x_sum / count
    var = jnp.maximum(x_sq / count - mean * mean, 0.0)  # biased variance
    scale = gamma.reshape(1, cin, 1).astype(jnp.float32) * jax.lax.rsqrt(var + _BN_EPS)
    shift = beta.reshape(1, cin, 1).astype(jnp.float32) - mean * scale
    scale2d = scale.reshape(cin, 1)
    shift2d = shift.reshape(cin, 1)
    w2d = conv_weight.reshape(cout, cin).astype(jnp.float32)

    # ---- pass 2: normalize + ReLU + 1x1 conv, lane-dense tiled output ------
    out_core = pl.pallas_call(
        _bn_relu_conv_kernel,
        out_shape=jax.ShapeDtypeStruct((n, cout, length), x.dtype),
        grid=(n, n_l_tiles),
        in_specs=[
            pl.BlockSpec((None, cin, tl), lambda b, l: (b, 0, l)),
            pl.BlockSpec((cin, 1), lambda b, l: (0, 0)),
            pl.BlockSpec((cin, 1), lambda b, l: (0, 0)),
            pl.BlockSpec((cout, cin), lambda b, l: (0, 0)),
        ],
        out_specs=pl.BlockSpec((None, cout, tl), lambda b, l: (b, 0, l)),
        compiler_params=pltpu.CompilerParams(
            dimension_semantics=("parallel", "parallel"),
            vmem_limit_bytes=_VMEM_LIMIT,
        ),
    )(x, scale2d, shift2d, w2d)

    # Conv1d(kernel_size=1, bias=False, padding=pad): border columns are zero.
    if pad > 0:
        return jnp.pad(out_core, ((0, 0), (0, 0), (pad, pad)))
    return out_core


def _reference(x, gamma, beta, conv_weight, kernel_size):
    """Pure-JAX reference mirroring the PyTorch forward (training-mode BN)."""
    pad = int(floor((kernel_size - 1) / 2))
    mean = jnp.mean(x, axis=(0, 2), keepdims=True)
    var = jnp.mean((x - mean) ** 2, axis=(0, 2), keepdims=True)
    y = (x - mean) / jnp.sqrt(var + _BN_EPS)
    y = y * gamma.reshape(1, -1, 1) + beta.reshape(1, -1, 1)
    y = jnp.maximum(y, 0.0)
    w2d = conv_weight.reshape(conv_weight.shape[0], conv_weight.shape[1])
    out = jnp.einsum("oc,ncl->nol", w2d, y)
    return jnp.pad(out, ((0, 0), (0, 0), (pad, pad)))


if __name__ == "__main__":
    # Small deterministic example consistent with the module's forward:
    # (N, in_channels, L); in_channels=8, out_channels=16, kernel_size=3.
    N, C_IN, C_OUT, L, KS = 4, 8, 16, 1024, 3

    key = jax.random.PRNGKey(0)
    kx, kg, kb, kw = jax.random.split(key, 4)
    x = jax.random.normal(kx, (N, C_IN, L), dtype=jnp.float32)
    gamma = jax.random.normal(kg, (C_IN,), dtype=jnp.float32) * 0.1 + 1.0
    beta = jax.random.normal(kb, (C_IN,), dtype=jnp.float32) * 0.1
    conv_w = jax.random.normal(kw, (C_OUT, C_IN, 1), dtype=jnp.float32) * 0.1

    out = jax.block_until_ready(dense_block_hidden_basic(x, gamma, beta, conv_w, KS))
    ref = _reference(x, gamma, beta, conv_w, KS)

    pad = int(floor((KS - 1) / 2))
    assert out.shape == (N, C_OUT, L + 2 * pad), out.shape
    assert jnp.allclose(out, ref, atol=1e-4, rtol=1e-4), float(
        jnp.max(jnp.abs(out - ref))
    )
    print("KERNEL_OK")
</pallas_src>

<mosaic_0001>
module attributes {stable_mosaic.version = 11 : i64} {
  func.func @_stats_kernel(%arg0: i32, %arg1: memref<4x8x512xf32, #tpu.memory_space<vmem>>, %arg2: memref<1x8x1xf32, #tpu.memory_space<vmem>>, %arg3: memref<1x8x1xf32, #tpu.memory_space<vmem>>) attributes {dimension_semantics = [#tpu.dimension_semantics<arbitrary>], iteration_bounds = array<i64: 2>, scalar_prefetch = 0 : i64, scratch_operands = 0 : i64, tpu.core_type = #tpu.core_type<tc>, window_params = [{transform_indices = @transform_0, window_bounds = array<i64: 4, 8, 512>}, {pipeline_mode = #tpu.pipeline_mode<synchronous>, transform_indices = @transform_1, window_bounds = array<i64: 1, 8, 1>}, {pipeline_mode = #tpu.pipeline_mode<synchronous>, transform_indices = @transform_2, window_bounds = array<i64: 1, 8, 1>}]} {
    %c0_i32 = arith.constant 0 : i32
    %0 = arith.cmpi eq, %arg0, %c0_i32 : i32
    %1 = arith.extui %0 : i1 to i32
    %c0_i32_0 = arith.constant 0 : i32
    %2 = arith.cmpi ne, %1, %c0_i32_0 : i32
    scf.if %2 {
      %cst_16 = arith.constant 0.000000e+00 : f32
      %15 = vector.broadcast %cst_16 : f32 to vector<1x8x1xf32>
      %c0_17 = arith.constant 0 : index
      %c0_18 = arith.constant 0 : index
      %c0_19 = arith.constant 0 : index
      %16 = vector.load %arg2[%c0_17, %c0_18, %c0_19] : memref<1x8x1xf32, #tpu.memory_space<vmem>>, vector<1x8x1xf32>
      tpu.vector_store %arg2[%c0_17, %c0_18, %c0_19], %15 {strides = array<i32>} : memref<1x8x1xf32, #tpu.memory_space<vmem>>, vector<1x8x1xf32>,
      %cst_20 = arith.constant 0.000000e+00 : f32
      %17 = vector.broadcast %cst_20 : f32 to vector<1x8x1xf32>
      %c0_21 = arith.constant 0 : index
      %c0_22 = arith.constant 0 : index
      %c0_23 = arith.constant 0 : index
      %18 = vector.load %arg3[%c0_21, %c0_22, %c0_23] : memref<1x8x1xf32, #tpu.memory_space<vmem>>, vector<1x8x1xf32>
      tpu.vector_store %arg3[%c0_21, %c0_22, %c0_23], %17 {strides = array<i32>} : memref<1x8x1xf32, #tpu.memory_space<vmem>>, vector<1x8x1xf32>,
    } else {
    }
    %c0 = arith.constant 0 : index
    %c0_1 = arith.constant 0 : index
    %c0_2 = arith.constant 0 : index
    %3 = vector.load %arg1[%c0, %c0_1, %c0_2] : memref<4x8x512xf32, #tpu.memory_space<vmem>>, vector<4x8x512xf32>
    %c0_3 = arith.constant 0 : index
    %c0_4 = arith.constant 0 : index
    %c0_5 = arith.constant 0 : index
    %4 = vector.load %arg2[%c0_3, %c0_4, %c0_5] : memref<1x8x1xf32, #tpu.memory_space<vmem>>, vector<1x8x1xf32>
    %cst = arith.constant dense<0.000000e+00> : vector<8xf32>
    %5 = vector.multi_reduction <add>, %3, %cst [0, 2] : vector<4x8x512xf32> to vector<8xf32>
    %6 = vector.shape_cast %5 : vector<8xf32> to vector<1x8x1xf32>
    %7 = arith.addf %4, %6 : vector<1x8x1xf32>
    %c0_6 = arith.constant 0 : index
    %c0_7 = arith.constant 0 : index
    %c0_8 = arith.constant 0 : index
    %8 = vector.load %arg2[%c0_6, %c0_7, %c0_8] : memref<1x8x1xf32, #tpu.memory_space<vmem>>, vector<1x8x1xf32>
    tpu.vector_store %arg2[%c0_6, %c0_7, %c0_8], %7 {strides = array<i32>} : memref<1x8x1xf32, #tpu.memory_space<vmem>>, vector<1x8x1xf32>,
    %c0_9 = arith.constant 0 : index
    %c0_10 = arith.constant 0 : index
    %c0_11 = arith.constant 0 : index
    %9 = vector.load %arg3[%c0_9, %c0_10, %c0_11] : memref<1x8x1xf32, #tpu.memory_space<vmem>>, vector<1x8x1xf32>
    %10 = arith.mulf %3, %3 : vector<4x8x512xf32>
    %cst_12 = arith.constant dense<0.000000e+00> : vector<8xf32>
    %11 = vector.multi_reduction <add>, %10, %cst_12 [0, 2] : vector<4x8x512xf32> to vector<8xf32>
    %12 = vector.shape_cast %11 : vector<8xf32> to vector<1x8x1xf32>
    %13 = arith.addf %9, %12 : vector<1x8x1xf32>
    %c0_13 = arith.constant 0 : index
    %c0_14 = arith.constant 0 : index
    %c0_15 = arith.constant 0 : index
    %14 = vector.load %arg3[%c0_13, %c0_14, %c0_15] : memref<1x8x1xf32, #tpu.memory_space<vmem>>, vector<1x8x1xf32>
    tpu.vector_store %arg3[%c0_13, %c0_14, %c0_15], %13 {strides = array<i32>} : memref<1x8x1xf32, #tpu.memory_space<vmem>>, vector<1x8x1xf32>,
    return
  }
  func.func @transform_0(%arg0: i32) -> (i32, i32, i32) {
    %c0_i32 = arith.constant 0 : i32
    %c0_i32_0 = arith.constant 0 : i32
    %c0_i32_1 = arith.constant 0 : i32
    return %c0_i32, %c0_i32_0, %arg0 : i32, i32, i32
  }
  func.func @transform_1(%arg0: i32) -> (i32, i32, i32) {
    %c0_i32 = arith.constant 0 : i32
    %c0_i32_0 = arith.constant 0 : i32
    %c0_i32_1 = arith.constant 0 : i32
    %c0_i32_2 = arith.constant 0 : i32
    return %c0_i32, %c0_i32_0, %c0_i32_1 : i32, i32, i32
  }
  func.func @transform_2(%arg0: i32) -> (i32, i32, i32) {
    %c0_i32 = arith.constant 0 : i32
    %c0_i32_0 = arith.constant 0 : i32
    %c0_i32_1 = arith.constant 0 : i32
    %c0_i32_2 = arith.constant 0 : i32
    return %c0_i32, %c0_i32_0, %c0_i32_1 : i32, i32, i32
  }
}

</mosaic_0001>

<bundles_post_ra>
// kernel: tpu_custom_call.1
= control target key start
LH: loop header
LB: loop body
LE: loop exit
PB: predicated region body
PF: predicated region fallthrough
CT: control target
= control target key end

     0   :  { %8 = vsyncpa [#allocation3], 0  ;;  %s552_s0 = inlined_call_operand.hbm [shape: f32[4,8,1024], index: 0, kind: input, shape index: {}]   ;;  %s553_s1 = inlined_call_operand.vmem [shape: f32[1,8,1], index: 1, kind: output, shape index: {0}]   ;;  %s554_s2 = inlined_call_operand.vmem [shape: f32[1,8,1], index: 2, kind: output, shape index: {1}]  }
   0x1   :  { %10 = vsyncpa [#allocation3 + $0x1], 0  ;;  %s414_s9 = smov 0   ;;  %s416_s10 = smov 0  }
   0x2   :  { %s418_s11 = smov 0   ;;  %s420_s12 = smov 0  }
   0x3 LB: > { %s273_s13 = sadd.s32 4294967295, %s392_s12   ;;  %s434_s14 = sadd.s32 1, %s392_s12   ;;  %s392_s12 = sphi %s420_s12, %s560_s12   ;;  %s388_s11 = sphi %s418_s11, %s559_s11   ;;  %s384_s10 = sphi %s416_s10, %s558_s10   ;;  %s380_s9 = sphi %s414_s9, %s557_s9  }
   0x4   : > { %s20_s15 = ssub.s32 %s392_s12, %s434_s14  ;;  %s23_s16 = sadd.s32 1, %s388_s11 }
   0x5   : > { %p21_p0 = scmp.eq.s32.totalorder %s20_s15, 0  ;;  %p30_p1 = scmp.ne.s32.totalorder %s388_s11, %s384_s10 }
   0x6   : > { %p31_p2 = scmp.eq.s32.totalorder %s392_s12, 0  ;;  %p36_p3 = scmp.ne.s32.totalorder %s384_s10, %s380_s9 }
   0x7   : > { %s444_s17 = scalar_select %p21_p0, %s388_s11, %s23_s16  }
   0x8   : > { %p32_p4 = por %p31_p2, %p30_p1  ;;  %p37_p5 = scmp.eq.s32.totalorder %s273_s13, 0 }
   0x9   : > { %p291_p6 = scmp.lt.s32.totalorder %s392_s12, 2  ;;  %s102_s19 = sand.u32 1, %s388_s11  }
   0xa   : > { %p449_p7 = por %p37_p5, %p36_p3  ;;  %s276_s20 = sshll.u32 %s102_s19, 7 }
   0xb   : > { %s284_s21 = sshll.u32 %s392_s12, 9  ;;  %s106_s25 = scalar_lea.vmem [#allocation2], %s276_s20 }
   0xc   : > { %s458_s24 = scalar_lea.hbm %s552_s0, %s284_s21  ;;  %s113_s26 = sshll.u32 %s106_s25, 4  ;;  %s460_s26 = int_to_ptr.vmem [resolvable:$true] %s113_s26 }
   0xd   : > { %p462_p8 = pnand %p291_p6, %p32_p4  ;;  %s466_s28 = scalar_lea.sflag [#allocation3], %s102_s19 }
   0xe   : > { %s328_s29 = scalar_lea.hbm %s458_s24, 2048  ;;  %s333_s4 = scalar_lea.hbm %s552_s0, 4096 }
   0xf   : > { %p329_p9 = scmp.ne.s32.totalorder %s458_s24, %s328_s29  ;;  %p330_p10 = pneg %p462_p8 }
  0x10   : > { %p334_p13 = scmp.lt.u32.totalorder %s458_s24, %s552_s0  ;;  %p335_p0 = scmp.lt.u32.totalorder %s333_s4, %s328_s29 }
  0x11   : > { %p331_p11 = pnand %p330_p10, %p329_p9  ;;  %p337_p2 = scmp.lt.u32.totalorder %s328_s29, %s458_s24 }
  0x12   : > { %p336_p1 = por %p335_p0, %p334_p13 }
  0x13   : > { %p332_p12 = pneg %p331_p11 }
  0x14   : > { %p338_p3 = por %p337_p2, %p336_p1 }
  0x16   : > { %p339_p4 = pnand %p338_p3, %p332_p12 }
  0x18   : > { %342 = shalt.err (!%p339_p4)
}
  0x19   : > { %s343_s7 = scalar_lea.vmem %s460_s26, 2048  ;;  %s394_s8 = smov [#allocation2]  }
  0x1a   : > { %p344_p5 = scmp.ne.s32.totalorder %s460_s26, %s343_s7  ;;  %s348_s9 = sshll.u32 %s394_s8, 4  ;;  %s349_s9 = int_to_ptr.vmem [resolvable:$false] %s348_s9 }
  0x1b   : > { %s350_s15 = scalar_lea.vmem %s349_s9, 4096  ;;  %p351_p11 = scmp.lt.s32.totalorder %s460_s26, %s349_s9 }
  0x1c   : > { %p346_p6 = pnand %p344_p5, %p330_p10  ;;  %p352_p13 = scmp.lt.s32.totalorder %s350_s15, %s343_s7 }
  0x1e   : > { %p347_p9 = pneg %p346_p6  ;;  %p353_p0 = por %p352_p13, %p351_p11 }
  0x20   : > { %p354_p1 = pnand %p353_p0, %p347_p9 }
  0x22   : > { %357 = shalt.err (!%p354_p1)
}
  0x23   : > { %s395_s16 = smov 1024   ;;  %s396_s19 = smov 512  }
  0x24   : > { %s397_s20 = smov 32   ;;  %p279_p10 = scmp.ge.s32.totalorder %s392_s12, 1 }
  0x25   : > { %290 = dma.hbm_to_vmem [thread:$0]  (!%p462_p8), %s458_s24, 2048, %s460_s26, %s466_s28, %s395_s16, %s396_s19, %s397_s20  }
  0x26   : > { %p121_p12 = scmp.lt.s32.totalorder %s392_s12, 3 }
  0x28   : > { %p122_p2 = pnand %p279_p10, %p121_p12 }
  0x29   : > { %s127_s21 = sand.u32 (!%p122_p2), 1, %s384_s10  }
  0x2a   : > { %125 = sbr.rel (%p122_p2) target bundleno = 239 (0xef), region = 24  ;;  %s280_s22 = sshll.u32 (!%p122_p2), %s127_s21, 7 }
  0x2b   : > { %s128_s23 = scalar_lea.sflag (!%p122_p2), [#allocation3], %s127_s21  ;;  %s497_s25 = scalar_lea.vmem (!%p122_p2), [#allocation2], %s280_s22 }
  0x31   : > { %375 = dma.done.wait (%p449_p7), %s128_s23, 2048  }
  0x32   : > { %377 = vsyncadd (%p449_p7), %s128_s23, 4294965248  ;;  %p281_p3 = scmp.ne.s32.totalorder %s273_s13, 0 }
  0x33   : > { %vm152_vm0 = vcmask (!%p281_p3), 7168   ;;  %v398_v0 = vmov (!%p281_p3), 0.0  }
  0x34   : > { %151 = sbr.rel (%p281_p3) target bundleno = 59 (0x3b), region = 32  ;;  %153 = vst.msk [vmem:[%s553_s1] sm:$0xff] (!%p281_p3), %vm152_vm0, %v398_v0  ;;  %154 = vst.msk [vmem:[%s554_s2] sm:$0xff] (!%p281_p3), %vm152_vm0, %v398_v0 }
  0x3b PF: > { %v155_v1 = vld [vmem:[%s497_s25] sm:$0xff]  ;;  %v156_v2 = vld [vmem:[%s497_s25 + $0x8] sm:$0xff]  ;;  %v157_v3 = vld [vmem:[%s497_s25 + $0x10] sm:$0xff]  ;;  %vm190_vm1 = vcmask 7168  }
  0x3c   : > { %v172_v4 = vadd.f32 %v156_v2, %v155_v1  ;;  %v193_v5 = vmul.f32 %v155_v1, %v155_v1  ;;  %v194_v6 = vmul.f32 %v156_v2, %v156_v2  ;;  %v158_v7 = vld [vmem:[%s497_s25 + $0x18] sm:$0xff]  ;;  %v195_v8 = vmul.f32 %v157_v3, %v157_v3  ;;  %v159_v10 = vld [vmem:[%s497_s25 + $0x20] sm:$0xff]  ;;  %v160_v14 = vld [vmem:[%s497_s25 + $0x28] sm:$0xff] }
  0x3d   : > { %v196_v11 = vmul.f32 %v158_v7, %v158_v7  ;;  %v197_v15 = vmul.f32 %v159_v10, %v159_v10  ;;  %v161_v18 = vld [vmem:[%s497_s25 + $0x30] sm:$0xff]  ;;  %v198_v19 = vmul.f32 %v160_v14, %v160_v14  ;;  %v162_v22 = vld [vmem:[%s497_s25 + $0x38] sm:$0xff]  ;;  %v163_v26 = vld [vmem:[%s497_s25 + $0x40] sm:$0xff] }
  0x3e   : > { %v173_v9 = vadd.f32 %v172_v4, %v157_v3  ;;  %v209_v12 = vadd.f32 %v194_v6, %v193_v5  ;;  %v199_v23 = vmul.f32 %v161_v18, %v161_v18  ;;  %v200_v27 = vmul.f32 %v162_v22, %v162_v22  ;;  %v164_v30 = vld [vmem:[%s497_s25 + $0x48] sm:$0xff]  ;;  %v165_v34 = vld [vmem:[%s497_s25 + $0x50] sm:$0xff]  ;;  %v166_v38 = vld [vmem:[%s497_s25 + $0x58] sm:$0xff] }
  0x3f   : > { %v201_v31 = vmul.f32 %v163_v26, %v163_v26  ;;  %v202_v35 = vmul.f32 %v164_v30, %v164_v30  ;;  %v203_v39 = vmul.f32 %v165_v34, %v165_v34  ;;  %v167_v42 = vld [vmem:[%s497_s25 + $0x60] sm:$0xff]  ;;  %v204_v43 = vmul.f32 %v166_v38, %v166_v38  ;;  %v168_v46 = vld [vmem:[%s497_s25 + $0x68] sm:$0xff]  ;;  %v169_v50 = vld [vmem:[%s497_s25 + $0x70] sm:$0xff] }
  0x40   : > { %v174_v13 = vadd.f32 %v173_v9, %v158_v7  ;;  %v210_v16 = vadd.f32 %v209_v12, %v195_v8  ;;  %v205_v47 = vmul.f32 %v167_v42, %v167_v42  ;;  %v206_v51 = vmul.f32 %v168_v46, %v168_v46  ;;  %v170_v54 = vld [vmem:[%s497_s25 + $0x78] sm:$0xff]  ;;  %v171_v63 = vld [vmem:[%s553_s1] sm:$0xff] }
  0x41   : > { %v207_v55 = vmul.f32 %v169_v50, %v169_v50  ;;  %v208_v58 = vmul.f32 %v170_v54, %v170_v54  ;;  %v192_v2 = vld [vmem:[%s554_s2] sm:$0xff] }
  0x42   : > { %v175_v17 = vadd.f32 %v174_v13, %v159_v10  ;;  %v211_v20 = vadd.f32 %v210_v16, %v196_v11 }
  0x44   : > { %v176_v21 = vadd.f32 %v175_v17, %v160_v14  ;;  %v212_v24 = vadd.f32 %v211_v20, %v197_v15 }
  0x46   : > { %v177_v25 = vadd.f32 %v176_v21, %v161_v18  ;;  %v213_v28 = vadd.f32 %v212_v24, %v198_v19 }
  0x48   : > { %v178_v29 = vadd.f32 %v177_v25, %v162_v22  ;;  %v214_v32 = vadd.f32 %v213_v28, %v199_v23 }
  0x4a   : > { %v179_v33 = vadd.f32 %v178_v29, %v163_v26  ;;  %v215_v36 = vadd.f32 %v214_v32, %v200_v27 }
  0x4c   : > { %v180_v37 = vadd.f32 %v179_v33, %v164_v30  ;;  %v216_v40 = vadd.f32 %v215_v36, %v201_v31 }
  0x4e   : > { %v181_v41 = vadd.f32 %v180_v37, %v165_v34  ;;  %v217_v44 = vadd.f32 %v216_v40, %v202_v35 }
  0x50   : > { %v182_v45 = vadd.f32 %v181_v41, %v166_v38  ;;  %v218_v48 = vadd.f32 %v217_v44, %v203_v39 }
  0x52   : > { %v183_v49 = vadd.f32 %v182_v45, %v167_v42  ;;  %v219_v52 = vadd.f32 %v218_v48, %v204_v43 }
  0x54   : > { %v184_v53 = vadd.f32 %v183_v49, %v168_v46  ;;  %v220_v56 = vadd.f32 %v219_v52, %v205_v47 }
  0x56   : > { %v185_v57 = vadd.f32 %v184_v53, %v169_v50  ;;  %v221_v59 = vadd.f32 %v220_v56, %v206_v51 }
  0x58   : > { %v186_v60 = vadd.f32 %v185_v57, %v170_v54  ;;  %v222_v61 = vadd.f32 %v221_v59, %v207_v55 }
  0x5a   : > { %187 = vadd.xlane.f32.xlu0 %v186_v60  ;;  %v223_v62 = vadd.f32 %v222_v61, %v208_v58 }
  0x5e   : > { %224 = vadd.xlane.f32.xlu0 %v223_v62 }
  0xe7   : > { %v188_v0 = vpop.xlane.xlu0 %187 }
  0xe8   : > { %v189_v1 = vadd.f32 %v188_v0, %v171_v63 }
  0xea   : > { %191 = vst.msk [vmem:[%s553_s1] sm:$0xff] %vm190_vm1, %v189_v1 }
  0xeb   : > { %v225_v3 = vpop.xlane.xlu0 %224 }
  0xec   : > { %v226_v4 = vadd.f32 %v225_v3, %v192_v2 }
  0xee   : > { %227 = vst.msk [vmem:[%s554_s2] sm:$0xff] %vm190_vm1, %v226_v4 }
  0xef PF: > { %p13_p7 = scmp.ge.s32.totalorder %s434_s14, 4   ;;  %s557_s9 = smov %s384_s10 }
  0xf0   : > { %s558_s10 = smov %s388_s11  ;;  %s559_s11 = smov %s444_s17 }
  0xf1   : > { %s560_s12 = smov %s434_s14  ;;  %15 = sbr.rel (!%p13_p7) target bundleno = 3 (0x3), region = 72 }
  0xf8   :  { %245 = vsyncpa [#allocation3], 1 }
  0xf9   :  { %247 = vsyncpa [#allocation3 + $0x1], 1 }

</bundles_post_ra>
